<compile_context>
chip_gen: v7x
topology: tpu7x:2x2x1
jax: 0.10.0
libtpu: 0.0.40
codegen_flags: <defaults>
</compile_context>

<pallas_src>
import functools

import jax
import jax.numpy as jnp
from jax.experimental import pallas as pl
from jax.experimental.pallas import tpu as pltpu


def _round_up(x, m):
    return ((x + m - 1) // m) * m


def tensor_fusion_kernel(*refs, dv, da, hp, use_carrier):
    """Fused TFN forward: outer-product + Linear1 + ReLU + eval-BN + Linear2.

    refs = (x_ref, w1_ref, w2_ref[, b2_ref], o_ref)
      x_ref  : (B, kin_p) f32       merged [visual | audio | 1 | 0-pad] lanes
      w1_ref : (kin_p, da1*hp) bf16 folded Linear1 (b1 + bias carrier folded in)
      w2_ref : (hp, op) bf16        folded Linear2 (eval-BN scale folded in)
      b2_ref : (1, op) f32          only present when use_carrier=False
      o_ref  : (B, op) f32          lane-dense padded output
    """
    if use_carrier:
        x_ref, w1_ref, w2_ref, o_ref = refs
    else:
        x_ref, w1_ref, w2_ref, b2_ref, o_ref = refs

    x = x_ref[...]                                           # (B, kin_p) f32

    # MXU #1: contract the visual (+ constant) lanes.  Audio / pad lanes have
    # all-zero weight rows, so the merged input costs nothing extra here.
    u = jnp.dot(x.astype(jnp.bfloat16), w1_ref[...],
                preferred_element_type=jnp.float32)          # (B, da1*hp) f32

    # Audio-constant block (j == da): coefficient is exactly 1.  It already
    # carries b1, all visual-constant terms and (optionally) the bias-carrier
    # hidden lane, so no multiply is needed for it.
    h = u[:, da * hp:(da + 1) * hp]                          # (B, hp) f32

    # VPU: the short audio contraction -- `da` lane-broadcast FMAs over
    # lane-aligned 128-wide slices of u (hp is a multiple of 128).
    for j in range(da):
        h = h + x[:, dv + j:dv + j + 1] * u[:, j * hp:(j + 1) * hp]

    h = jnp.maximum(h, 0.0)                                  # ReLU (carrier lane stays 1.0)

    # MXU #2: Linear2 with eval-mode BatchNorm folded into W2' (b2 either in the
    # carrier row of W2' or added explicitly).
    out = jnp.dot(h.astype(jnp.bfloat16), w2_ref[...],
                  preferred_element_type=jnp.float32)        # (B, op) f32
    if not use_carrier:
        out = out + b2_ref[...]
    o_ref[...] = out


def prepare_params(params, visual_dim, audio_dim):
    """One-time weight folding / padding (hoisted out of the per-call path)."""
    dv, da = visual_dim, audio_dim
    dv1, da1 = dv + 1, da + 1
    hidden = params["w1"].shape[0]
    out_dim = params["w2"].shape[0]

    # Bias-carrier guard: only spend a hidden lane on the carrier when it does
    # NOT grow the padded hidden width (i.e. hidden is not a multiple of 128).
    use_carrier = _round_up(hidden + 1, 128) == _round_up(hidden, 128)
    hp = _round_up(hidden + 1, 128) if use_carrier else _round_up(hidden, 128)
    op = _round_up(out_dim, 128)            # lane-dense output
    kin = dv + da + 1                       # [visual | audio | 1]
    kin_p = _round_up(kin, 16)              # bf16 sublane tile height (NOT 128; see header)

    # --- Linear1: (H, Dv1*Da1) with index [k, i*Da1 + j] -> (kin_p, Da1*Hp) ---
    w1_3d = params["w1"].reshape(hidden, dv1, da1).transpose(1, 2, 0)   # [i, j, k]
    w1_3d = w1_3d.at[dv, da, :].add(params["b1"])    # fold b1 into the 1*1 term

    w1_pad = jnp.zeros((kin_p, da1, hp), jnp.float32)
    w1_pad = w1_pad.at[:dv, :, :hidden].set(w1_3d[:dv])        # visual rows
    w1_pad = w1_pad.at[dv + da, :, :hidden].set(w1_3d[dv])     # constant-1 row
    if use_carrier:
        # Bias-carrier hidden lane: h[:, hidden] == 1 after contraction & ReLU.
        w1_pad = w1_pad.at[dv + da, da, hidden].set(1.0)
    w1p = w1_pad.reshape(kin_p, da1 * hp).astype(jnp.bfloat16)

    # --- Fold eval-mode BatchNorm1d + b2 into Linear2 ---
    inv_std = 1.0 / jnp.sqrt(params["bn_var"] + 1e-5)
    scale = params["bn_gamma"] * inv_std                        # (H,)
    shift = params["bn_beta"] - params["bn_mean"] * scale       # (H,)
    w2_eff = params["w2"] * scale[None, :]                      # (O, H)
    b2_eff = params["b2"] + params["w2"] @ shift                # (O,)

    w2_pad = jnp.zeros((hp, op), jnp.float32)
    w2_pad = w2_pad.at[:hidden, :out_dim].set(w2_eff.T)
    if use_carrier:
        w2_pad = w2_pad.at[hidden, :out_dim].set(b2_eff)        # bias-carrier row
    w2p = w2_pad.astype(jnp.bfloat16)

    # Explicit bias row, only consumed when use_carrier=False.
    b2row = jnp.zeros((1, op), jnp.float32).at[0, :out_dim].set(b2_eff)

    return dict(w1p=w1p, w2p=w2p, b2row=b2row,
                dv=dv, da=da, da1=da1, hp=hp, op=op,
                kin=kin, kin_p=kin_p, out_dim=out_dim, hidden=hidden,
                use_carrier=use_carrier)


def _build_x(visual, audio, kin, kin_p):
    """Merged lane-dense input [visual | audio | 1 | 0-pad] -- one concatenate."""
    B = visual.shape[0]
    parts = [visual.astype(jnp.float32), audio.astype(jnp.float32),
             jnp.ones((B, 1), jnp.float32)]
    if kin_p > kin:
        parts.append(jnp.zeros((B, kin_p - kin), jnp.float32))
    return jnp.concatenate(parts, axis=1)


def make_tensor_fusion(prepped):
    """Returns a jitted forward(visual, audio) -> (B, out_dim)."""
    dv, da, hp, op = prepped["dv"], prepped["da"], prepped["hp"], prepped["op"]
    kin, kin_p = prepped["kin"], prepped["kin_p"]
    out_dim = prepped["out_dim"]
    use_carrier = prepped["use_carrier"]
    w1p, w2p, b2row = prepped["w1p"], prepped["w2p"], prepped["b2row"]

    kernel = functools.partial(tensor_fusion_kernel, dv=dv, da=da, hp=hp,
                               use_carrier=use_carrier)
    vmem = pl.BlockSpec(memory_space=pltpu.MemorySpace.VMEM)
    n_in = 3 if use_carrier else 4

    @jax.jit
    def forward(visual, audio):
        B = visual.shape[0]
        x = _build_x(visual, audio, kin, kin_p)               # (B, kin_p)
        args = (x, w1p, w2p) if use_carrier else (x, w1p, w2p, b2row)
        out = pl.pallas_call(
            kernel,
            out_shape=jax.ShapeDtypeStruct((B, op), jnp.float32),
            in_specs=[vmem] * n_in,
            out_specs=vmem,
        )(*args)
        # Narrowing stays inside the same jit (fused, not a separate dispatch);
        # perf-critical consumers should take the padded lane-dense slab instead.
        return out[:, :out_dim]

    return forward


def kernel_mirror(visual, audio, p):
    """Pure-JAX mirror of the folded bf16 kernel math (structural check)."""
    x = _build_x(visual, audio, p["kin"], p["kin_p"])
    dv, da, hp = p["dv"], p["da"], p["hp"]
    u = jnp.dot(x.astype(jnp.bfloat16), p["w1p"], preferred_element_type=jnp.float32)
    h = u[:, da * hp:(da + 1) * hp]
    for j in range(da):
        h = h + x[:, dv + j:dv + j + 1] * u[:, j * hp:(j + 1) * hp]
    h = jnp.maximum(h, 0.0)
    out = jnp.dot(h.astype(jnp.bfloat16), p["w2p"], preferred_element_type=jnp.float32)
    if not p["use_carrier"]:
        out = out + p["b2row"]
    return out[:, :p["out_dim"]]


def reference(visual, audio, params):
    """Pure-JAX f32 reference mirroring the PyTorch module (eval mode)."""
    B = visual.shape[0]
    ones = jnp.ones((B, 1), visual.dtype)
    v_ = jnp.concatenate([visual, ones], axis=1)
    a_ = jnp.concatenate([audio, ones], axis=1)
    fusion = (v_[:, :, None] * a_[:, None, :]).reshape(B, -1)
    h = fusion @ params["w1"].T + params["b1"]
    h = jnp.maximum(h, 0.0)
    h = ((h - params["bn_mean"]) / jnp.sqrt(params["bn_var"] + 1e-5)
         * params["bn_gamma"] + params["bn_beta"])
    return h @ params["w2"].T + params["b2"]


def _make_params(key, visual_dim, audio_dim, hidden_dim, out_dim):
    fused_dim = (visual_dim + 1) * (audio_dim + 1)
    ks = jax.random.split(key, 8)
    lim1 = 1.0 / jnp.sqrt(fused_dim)
    lim2 = 1.0 / jnp.sqrt(hidden_dim)
    return {
        "w1": jax.random.uniform(ks[0], (hidden_dim, fused_dim), jnp.float32, -lim1, lim1),
        "b1": jax.random.uniform(ks[1], (hidden_dim,), jnp.float32, -lim1, lim1),
        "bn_gamma": 1.0 + 0.1 * jax.random.normal(ks[2], (hidden_dim,), jnp.float32),
        "bn_beta": 0.1 * jax.random.normal(ks[3], (hidden_dim,), jnp.float32),
        "bn_mean": 0.05 * jax.random.normal(ks[4], (hidden_dim,), jnp.float32),
        "bn_var": jnp.abs(1.0 + 0.1 * jax.random.normal(ks[5], (hidden_dim,), jnp.float32)),
        "w2": jax.random.uniform(ks[6], (out_dim, hidden_dim), jnp.float32, -lim2, lim2),
        "b2": jax.random.uniform(ks[7], (out_dim,), jnp.float32, -lim2, lim2),
    }


if __name__ == "__main__":
    B, visual_dim, audio_dim, out_dim = 8, 16, 8, 21
    key = jax.random.PRNGKey(0)
    k_v, k_a, k_p = jax.random.split(key, 3)
    visual = jax.random.normal(k_v, (B, visual_dim), jnp.float32)
    audio = jax.random.normal(k_a, (B, audio_dim), jnp.float32)

    # hidden=32 exercises the bias-carrier path; hidden=128 exercises the
    # explicit-bias guard (hidden % 128 == 0 -> no carrier lane).
    for hidden_dim in (32, 128):
        params = _make_params(jax.random.fold_in(k_p, hidden_dim),
                              visual_dim, audio_dim, hidden_dim, out_dim)
        prepped = prepare_params(params, visual_dim, audio_dim)
        forward = make_tensor_fusion(prepped)

        out = jax.block_until_ready(forward(visual, audio))
        assert out.shape == (B, out_dim), out.shape

        # Tight structural check: the Pallas kernel vs. the same folded bf16
        # math run through plain XLA.
        mirror = jax.block_until_ready(kernel_mirror(visual, audio, prepped))
        err_s = float(jnp.max(jnp.abs(out - mirror)))
        assert err_s < 1e-3, f"hidden={hidden_dim}: structural max abs err {err_s}"

        # Semantics check vs. the exact f32 module reference (tolerance reflects
        # the deliberate bf16 weight quantization).
        ref = jax.block_until_ready(reference(visual, audio, params))
        err_r = float(jnp.max(jnp.abs(out - ref)))
        assert jnp.allclose(out, ref, rtol=5e-2, atol=5e-2), \
            f"hidden={hidden_dim}: max abs err vs f32 reference {err_r}"

    print("KERNEL_OK")
</pallas_src>

<mosaic_0001>
module attributes {stable_mosaic.version = 11 : i64} {
  func.func @tensor_fusion_kernel(%arg0: memref<8x32xf32, #tpu.memory_space<vmem>>, %arg1: memref<32x1152xbf16, #tpu.memory_space<vmem>>, %arg2: memref<128x128xbf16, #tpu.memory_space<vmem>>, %arg3: memref<8x128xf32, #tpu.memory_space<vmem>>) attributes {dimension_semantics = [], scalar_prefetch = 0 : i64, scratch_operands = 0 : i64, tpu.core_type = #tpu.core_type<tc>} {
    %c0 = arith.constant 0 : index
    %c0_0 = arith.constant 0 : index
    %0 = vector.load %arg0[%c0, %c0_0] : memref<8x32xf32, #tpu.memory_space<vmem>>, vector<8x32xf32>
    %1 = arith.truncf %0 : vector<8x32xf32> to vector<8x32xbf16>
    %c0_1 = arith.constant 0 : index
    %c0_2 = arith.constant 0 : index
    %2 = vector.load %arg1[%c0_1, %c0_2] : memref<32x1152xbf16, #tpu.memory_space<vmem>>, vector<32x1152xbf16>
    %cst = arith.constant dense<0.000000e+00> : vector<8x1152xf32>
    %3 = tpu.matmul %1, %2, %cst {dimension_numbers = #tpu.dot_dimension_numbers<[1], [0], [0], [1], [0, 0, 1, 1], [], []>} : vector<8x32xbf16>, vector<32x1152xbf16>, vector<8x1152xf32> -> vector<8x1152xf32>
    %4 = vector.extract_strided_slice %3 {offsets = [0, 1024], sizes = [8, 128], strides = [1, 1]} : vector<8x1152xf32> to vector<8x128xf32>
    %5 = vector.extract_strided_slice %0 {offsets = [0, 16], sizes = [8, 1], strides = [1, 1]} : vector<8x32xf32> to vector<8x1xf32>
    %6 = vector.extract_strided_slice %3 {offsets = [0, 0], sizes = [8, 128], strides = [1, 1]} : vector<8x1152xf32> to vector<8x128xf32>
    %7 = vector.broadcast %5 : vector<8x1xf32> to vector<8x128xf32>
    %8 = arith.mulf %7, %6 : vector<8x128xf32>
    %9 = arith.addf %4, %8 : vector<8x128xf32>
    %10 = vector.extract_strided_slice %0 {offsets = [0, 17], sizes = [8, 1], strides = [1, 1]} : vector<8x32xf32> to vector<8x1xf32>
    %11 = vector.extract_strided_slice %3 {offsets = [0, 128], sizes = [8, 128], strides = [1, 1]} : vector<8x1152xf32> to vector<8x128xf32>
    %12 = vector.broadcast %10 : vector<8x1xf32> to vector<8x128xf32>
    %13 = arith.mulf %12, %11 : vector<8x128xf32>
    %14 = arith.addf %9, %13 : vector<8x128xf32>
    %15 = vector.extract_strided_slice %0 {offsets = [0, 18], sizes = [8, 1], strides = [1, 1]} : vector<8x32xf32> to vector<8x1xf32>
    %16 = vector.extract_strided_slice %3 {offsets = [0, 256], sizes = [8, 128], strides = [1, 1]} : vector<8x1152xf32> to vector<8x128xf32>
    %17 = vector.broadcast %15 : vector<8x1xf32> to vector<8x128xf32>
    %18 = arith.mulf %17, %16 : vector<8x128xf32>
    %19 = arith.addf %14, %18 : vector<8x128xf32>
    %20 = vector.extract_strided_slice %0 {offsets = [0, 19], sizes = [8, 1], strides = [1, 1]} : vector<8x32xf32> to vector<8x1xf32>
    %21 = vector.extract_strided_slice %3 {offsets = [0, 384], sizes = [8, 128], strides = [1, 1]} : vector<8x1152xf32> to vector<8x128xf32>
    %22 = vector.broadcast %20 : vector<8x1xf32> to vector<8x128xf32>
    %23 = arith.mulf %22, %21 : vector<8x128xf32>
    %24 = arith.addf %19, %23 : vector<8x128xf32>
    %25 = vector.extract_strided_slice %0 {offsets = [0, 20], sizes = [8, 1], strides = [1, 1]} : vector<8x32xf32> to vector<8x1xf32>
    %26 = vector.extract_strided_slice %3 {offsets = [0, 512], sizes = [8, 128], strides = [1, 1]} : vector<8x1152xf32> to vector<8x128xf32>
    %27 = vector.broadcast %25 : vector<8x1xf32> to vector<8x128xf32>
    %28 = arith.mulf %27, %26 : vector<8x128xf32>
    %29 = arith.addf %24, %28 : vector<8x128xf32>
    %30 = vector.extract_strided_slice %0 {offsets = [0, 21], sizes = [8, 1], strides = [1, 1]} : vector<8x32xf32> to vector<8x1xf32>
    %31 = vector.extract_strided_slice %3 {offsets = [0, 640], sizes = [8, 128], strides = [1, 1]} : vector<8x1152xf32> to vector<8x128xf32>
    %32 = vector.broadcast %30 : vector<8x1xf32> to vector<8x128xf32>
    %33 = arith.mulf %32, %31 : vector<8x128xf32>
    %34 = arith.addf %29, %33 : vector<8x128xf32>
    %35 = vector.extract_strided_slice %0 {offsets = [0, 22], sizes = [8, 1], strides = [1, 1]} : vector<8x32xf32> to vector<8x1xf32>
    %36 = vector.extract_strided_slice %3 {offsets = [0, 768], sizes = [8, 128], strides = [1, 1]} : vector<8x1152xf32> to vector<8x128xf32>
    %37 = vector.broadcast %35 : vector<8x1xf32> to vector<8x128xf32>
    %38 = arith.mulf %37, %36 : vector<8x128xf32>
    %39 = arith.addf %34, %38 : vector<8x128xf32>
    %40 = vector.extract_strided_slice %0 {offsets = [0, 23], sizes = [8, 1], strides = [1, 1]} : vector<8x32xf32> to vector<8x1xf32>
    %41 = vector.extract_strided_slice %3 {offsets = [0, 896], sizes = [8, 128], strides = [1, 1]} : vector<8x1152xf32> to vector<8x128xf32>
    %42 = vector.broadcast %40 : vector<8x1xf32> to vector<8x128xf32>
    %43 = arith.mulf %42, %41 : vector<8x128xf32>
    %44 = arith.addf %39, %43 : vector<8x128xf32>
    %cst_3 = arith.constant 0.000000e+00 : f32
    %45 = vector.broadcast %cst_3 : f32 to vector<8x128xf32>
    %46 = arith.maximumf %44, %45 : vector<8x128xf32>
    %47 = arith.truncf %46 : vector<8x128xf32> to vector<8x128xbf16>
    %c0_4 = arith.constant 0 : index
    %c0_5 = arith.constant 0 : index
    %48 = vector.load %arg2[%c0_4, %c0_5] : memref<128x128xbf16, #tpu.memory_space<vmem>>, vector<128x128xbf16>
    %cst_6 = arith.constant dense<0.000000e+00> : vector<8x128xf32>
    %49 = tpu.matmul %47, %48, %cst_6 {dimension_numbers = #tpu.dot_dimension_numbers<[1], [0], [0], [1], [0, 0, 1, 1], [], []>} : vector<8x128xbf16>, vector<128x128xbf16>, vector<8x128xf32> -> vector<8x128xf32>
    %c0_7 = arith.constant 0 : index
    %c0_8 = arith.constant 0 : index
    %50 = vector.load %arg3[%c0_7, %c0_8] : memref<8x128xf32, #tpu.memory_space<vmem>>, vector<8x128xf32>
    tpu.vector_store %arg3[%c0_7, %c0_8], %49 {strides = array<i32>} : memref<8x128xf32, #tpu.memory_space<vmem>>, vector<8x128xf32>,
    return
  }
}

</mosaic_0001>

<bundles_post_ra>
// kernel: forward.1
= control target key start
LH: loop header
LB: loop body
LE: loop exit
PB: predicated region body
PF: predicated region fallthrough
CT: control target
= control target key end

     0   :  { %v658_v2 = vmov 0   ;;  %v659_v6 = vmov 16   ;;  %v660_v8 = vmov 18   ;;  %vm130_vm0 = vcmask 261120   ;;  %s807_s0 = inlined_call_operand.vmem [shape: f32[8,32], index: 0, kind: input, shape index: {}]   ;;  %s808_s1 = inlined_call_operand.vmem [shape: bf16[32,1152], index: 1, kind: input, shape index: {}]   ;;  %s809_s2 = inlined_call_operand.vmem [shape: bf16[128,128], index: 2, kind: input, shape index: {}]   ;;  %s810_s3 = inlined_call_operand.hbm [shape: f32[8,128], index: 3, kind: output, shape index: {}]  }
   0x1   :  { %v600_v0 = vld [vmem:[%s808_s1 + $0x4] ss:$36 sps:$4 sm:$0xff]   ;;  %166 = vmatprep.mubr.bf16.mxu0 %v658_v2  ;;  %289 = vmatprep.mubr.bf16.mxu1 %v658_v2  ;;  %v603_v3 = vld [vmem:[%s808_s1 + $0x4c] ss:$36 sps:$4 sm:$0xff]   ;;  %v611_v11 = vld [vmem:[%s808_s1 + $0x54] ss:$36 sps:$4 sm:$0xff]  }
   0x2   :  { %v602_v1 = vld [vmem:[%s808_s1] ss:$36 sps:$4 sm:$0xff]   ;;  %134 = vmatprep.subr.bf16.mxu0 %v600_v0  ;;  %v605_v4 = vld [vmem:[%s808_s1 + $0x48] ss:$36 sps:$4 sm:$0xff]   ;;  %591 = vset.pattern.permute.xlu0 %v659_v6  ;;  %v661_v12 = vmov 17   ;;  %v662_v15 = vmov 19  }
   0x3   :  { %135 = vmatpush1.bf16.msra.mxu0 %v602_v1  ;;  %v705_v5 = vld [vmem:[%s807_s0] sm:$0xff]  ;;  %v608_v7 = vld [vmem:[%s808_s1 + $0xc] ss:$36 sps:$4 sm:$0xff]   ;;  %593 = vset.pattern.permute.xlu1 %v660_v8  ;;  %v614_v14 = vld [vmem:[%s808_s1 + $0x14] ss:$36 sps:$4 sm:$0xff]   ;;  %v663_v21 = vmov 21  }
   0x4   :  { %136 = vmatprep.subr.bf16.mxu0 %v603_v3  ;;  %340 = vperm.xlu0 %591, %v705_v5   ;;  %v713_v9 = vpack.c.bf16 %v705_v5, %v705_v5  ;;  %v606_v10 = vld [vmem:[%s808_s1 + $0x8] ss:$36 sps:$4 sm:$0xff]   ;;  %v609_v13 = vld [vmem:[%s808_s1 + $0x50] ss:$36 sps:$4 sm:$0xff]   ;;  %v620_v16 = vld [vmem:[%s808_s1 + $0x1c] ss:$36 sps:$4 sm:$0xff]  }
   0x5   :  { %352 = vperm.xlu1 %593, %v705_v5   ;;  %v622_v17 = vld [vmem:[%s808_s1 + $0x18] ss:$36 sps:$4 sm:$0xff]   ;;  %v623_v18 = vld [vmem:[%s808_s1 + $0x64] ss:$36 sps:$4 sm:$0xff]   ;;  %v612_v20 = vld [vmem:[%s808_s1 + $0x10] ss:$36 sps:$4 sm:$0xff]   ;;  %257 = vmatprep.subr.bf16.mxu1 %v620_v16 }
   0x6   :  { %v625_v19 = vld [vmem:[%s808_s1 + $0x60] ss:$36 sps:$4 sm:$0xff]   ;;  %258 = vmatpush1.bf16.msra.mxu1 %v622_v17  ;;  %v664_v23 = vmov 20  }
   0x7   :  { %137 = vmatpush1.bf16.msra.mxu0 %v605_v4  ;;  %v617_v22 = vld [vmem:[%s808_s1 + $0x5c] ss:$36 sps:$4 sm:$0xff]   ;;  %259 = vmatprep.subr.bf16.mxu1 %v623_v18 }
   0x8   :  { %175 = vmatprep.subr.bf16.mxu0 %v608_v7  ;;  %592 = vset.pattern.permute.xlu0 %v661_v12 }
   0x9   :  { %346 = vperm.xlu0 %592, %v705_v5   ;;  %594 = vset.pattern.permute.xlu1 %v662_v15 }
   0xa   :  { %526 = vmatmul.mubr.msk.bf16.vlgmr.msra.gmra.mrb[0].mxu0 %vm130_vm0, %v713_v9  ;;  %358 = vperm.xlu1 %594, %v705_v5  }
   0xb   :  { %176 = vmatpush1.bf16.msra.mxu0 %v606_v10  ;;  %207 = vmatprep.mubr.bf16.mxu0 %v658_v2 }
   0xc   :  { %177 = vmatprep.subr.bf16.mxu0 %v611_v11  ;;  %260 = vmatpush1.bf16.msra.mxu1 %v625_v19 }
   0xd   :  { %596 = vset.pattern.permute.xlu0 %v663_v21 }
   0xe   :  { %370 = vperm.xlu0 %596, %v705_v5   ;;  %595 = vset.pattern.permute.xlu1 %v664_v23 }
   0xf   :  { %178 = vmatpush1.bf16.msra.mxu0 %v609_v13  ;;  %364 = vperm.xlu1 %595, %v705_v5  }
  0x10   :  { %216 = vmatprep.subr.bf16.mxu0 %v614_v14 }
  0x12   :  { %527 = vmatmul.mubr.msk.bf16.vlgmr.msra.gmra.mrb[4].mxu0 %vm130_vm0, %v713_v9 }
  0x13   :  { %8 = vsyncpa [#allocation3], 0  ;;  %217 = vmatpush1.bf16.msra.mxu0 %v612_v20  ;;  %v615_v24 = vld [vmem:[%s808_s1 + $0x58] ss:$36 sps:$4 sm:$0xff]   ;;  %248 = vmatprep.mubr.bf16.mxu0 %v658_v2  ;;  %v665_v25 = vmov 0.0   ;;  %v666_v26 = vmov 22  }
  0x14   :  { %218 = vmatprep.subr.bf16.mxu0 %v617_v22  ;;  %559 = vmatprep.subr.bf16.mxu1 %v665_v25  ;;  %vm667_vm1 = vmmov 0   ;;  %v618_v27 = vld [vmem:[%s808_s1 + $0x20] ss:$36 sps:$4 sm:$0xff]   ;;  %v668_v28 = vmov 23   ;;  %v619_v29 = vld [vmem:[%s808_s1 + $0x68] ss:$36 sps:$4 sm:$0xff]  }
  0x15   :  { %529 = vmatmul.mubr.msk.bf16.vlgmr.msra.gmra.mrb[0].mxu1 %vm130_vm0, %v713_v9  ;;  %597 = vset.pattern.permute.xlu1 %v666_v26  ;;  %v626_v30 = vld [vmem:[%s809_s2] sm:$0xff]   ;;  %v627_v31 = vld [vmem:[%s809_s2 + $0x8] sm:$0xff]   ;;  %v628_v32 = vld [vmem:[%s809_s2 + $0x10] sm:$0xff]  }
  0x16   :  { %376 = vperm.xlu1 %597, %v705_v5   ;;  %575 = vmatprep.mubr.msk.bf16.mxu1 %vm667_vm1, %v665_v25  ;;  %v629_v33 = vld [vmem:[%s809_s2 + $0x18] sm:$0xff]   ;;  %v630_v34 = vld [vmem:[%s809_s2 + $0x20] sm:$0xff]   ;;  %v631_v35 = vld [vmem:[%s809_s2 + $0x28] sm:$0xff]  }
  0x17   :  { %219 = vmatpush1.bf16.msra.mxu0 %v615_v24  ;;  %599 = vset.pattern.permute.xlu0 %v668_v28  ;;  %v632_v36 = vld [vmem:[%s809_s2 + $0x30] sm:$0xff]   ;;  %v633_v37 = vld [vmem:[%s809_s2 + $0x38] sm:$0xff]   ;;  %s669_s2 = smov [#allocation2]  }
  0x18   :  { %551 = vmatprep.subr.bf16.mxu0 %v665_v25  ;;  %560 = vmatpush3.bf16.msra.mxu1 %v626_v30  ;;  %s500_s9 = sshll.u32 %s669_s2, 4  ;;  %s501_s9 = int_to_ptr.vmem [resolvable:$true] %s500_s9 }
  0x19   :  { %561 = vmatprep.subr.bf16.mxu1 %v665_v25  ;;  %s634_s10 = scalar_lea.vmem %s501_s9, 128  ;;  %p639_p1 = scmp.lt.s32.totalorder %s501_s9, %s501_s9 }
  0x1a   :  { %528 = vmatmul.mubr.msk.bf16.vlgmr.msra.gmra.mrb[8].mxu0 %vm130_vm0, %v713_v9  ;;  %598 = vset.pattern.permute.xlu1 %v668_v28  ;;  %p635_p0 = scmp.ne.s32.totalorder %s501_s9, %s634_s10  ;;  %p640_p2 = scmp.lt.s32.totalorder %s634_s10, %s634_s10 }
  0x1b   :  { %552 = vmatpush3.bf16.msra.mxu0 %v618_v27  ;;  %555 = vmatprep.mubr.msk.bf16.mxu0 %vm667_vm1, %v665_v25 }
  0x1c   :  { %553 = vmatprep.subr.bf16.mxu0 %v665_v25  ;;  %382 = vperm.xlu1 %598, %v705_v5   ;;  %p641_p3 = por %p640_p2, %p639_p1 }
  0x1d   :  { %562 = vmatpush3.bf16.msra.mxu1 %v627_v31 }
  0x1e   :  { %563 = vmatprep.subr.bf16.mxu1 %v665_v25  ;;  %p642_p4 = pnand %p641_p3, %p635_p0 }
  0x1f   :  { %554 = vmatpush3.bf16.msra.mxu0 %v619_v29 }
  0x21   :  { %564 = vmatpush3.bf16.msra.mxu1 %v628_v32 }
  0x22   :  { %556 = vmatmul.mubr.msk.bf16.vlgmr.msra.gmra.mrb[12].mxu0 %vm130_vm0, %v713_v9  ;;  %565 = vmatprep.subr.bf16.mxu1 %v665_v25 }
  0x25   :  { %566 = vmatpush3.bf16.msra.mxu1 %v629_v33 }
  0x26   :  { %567 = vmatprep.subr.bf16.mxu1 %v665_v25 }
  0x29   :  { %568 = vmatpush3.bf16.msra.mxu1 %v630_v34 }
  0x2a   :  { %569 = vmatprep.subr.bf16.mxu1 %v665_v25 }
  0x2d   :  { %570 = vmatpush3.bf16.msra.mxu1 %v631_v35 }
  0x2e   :  { %571 = vmatprep.subr.bf16.mxu1 %v665_v25 }
  0x31   :  { %572 = vmatpush3.bf16.msra.mxu1 %v632_v36 }
  0x32   :  { %573 = vmatprep.subr.bf16.mxu1 %v665_v25 }
  0x35   :  { %574 = vmatpush3.bf16.msra.mxu1 %v633_v37 }
  0x83   :  { %v341_v51 = vpop.permute.xlu0 %340 }
  0x84   :  { %v353_v49 = vpop.permute.xlu1 %352 }
  0x88   :  { %v347_v57 = vpop.permute.xlu0 %346 }
  0x89   :  { %v359_v56 = vpop.permute.xlu1 %358 }
  0x8d   :  { %v371_v7 = vpop.permute.xlu0 %370 }
  0x8e   :  { %v365_v59 = vpop.permute.xlu1 %364 }
  0x95   :  { %v377_v4 = vpop.permute.xlu1 %376 }
  0x9b   :  { %v383_v12 = vpop.permute.xlu1 %382 }
  0xdd   :  { %v168_v38 = vpop.f32.mrb[0].mxu0 }
  0xde   :  { %v170_v39 = vpop.f32.mrb[1].mxu0  ;;  %v343_v58 = vmul.f32 %v341_v51, %v168_v38 }
  0xdf   :  { %v172_v40 = vpop.f32.mrb[2].mxu0  ;;  %v349_v61 = vmul.f32 %v347_v57, %v170_v39 }
  0xe0   :  { %v173_v41 = vpop.f32.mrb[3].mxu0 }
  0xe5   :  { %v209_v42 = vpop.f32.mrb[4].mxu0 }
  0xe6   :  { %v211_v43 = vpop.f32.mrb[5].mxu0  ;;  %v355_v1 = vmul.f32 %v353_v49, %v209_v42 }
  0xe7   :  { %v213_v44 = vpop.f32.mrb[6].mxu0  ;;  %v361_v5 = vmul.f32 %v359_v56, %v211_v43 }
  0xe8   :  { %v214_v45 = vpop.f32.mrb[7].mxu0  ;;  %v291_v46 = vpop.f32.mrb[0].mxu1 }
  0xe9   :  { %v293_v47 = vpop.f32.mrb[1].mxu1  ;;  %v379_v14 = vmul.f32 %v377_v4, %v291_v46 }
  0xea   :  { %v295_v48 = vpop.f32.mrb[2].mxu1  ;;  %v385_v16 = vmul.f32 %v383_v12, %v293_v47 }
  0xeb   :  { %v296_v50 = vpop.f32.mrb[3].mxu1 }
  0xed   :  { %v250_v52 = vpop.f32.mrb[8].mxu0 }
  0xee   :  { %v252_v53 = vpop.f32.mrb[9].mxu0  ;;  %v367_v8 = vmul.f32 %v365_v59, %v250_v52 }
  0xef   :  { %v254_v54 = vpop.f32.mrb[10].mxu0  ;;  %v373_v10 = vmul.f32 %v371_v7, %v252_v53 }
  0xf0   :  { %v255_v55 = vpop.f32.mrb[11].mxu0 }
  0xf5   :  { %v332_v60 = vpop.f32.mrb[12].mxu0 }
  0xf6   :  { %v344_v62 = vadd.f32 %v343_v58, %v332_v60  ;;  %v557_v63 = vpop.f32.mrb[13].mxu0 }
  0xf7   :  { %v335_v0 = vpop.f32.mrb[14].mxu0 }
  0xf8   :  { %v350_v2 = vadd.f32 %v349_v61, %v344_v62  ;;  %v558_v3 = vpop.f32.mrb[15].mxu0 }
  0xfa   :  { %v356_v6 = vadd.f32 %v355_v1, %v350_v2 }
  0xfc   :  { %v362_v9 = vadd.f32 %v361_v5, %v356_v6 }
  0xfe   :  { %v368_v11 = vadd.f32 %v367_v8, %v362_v9 }
 0x100   :  { %v374_v13 = vadd.f32 %v373_v10, %v368_v11 }
 0x102   :  { %v380_v15 = vadd.f32 %v379_v14, %v374_v13 }
 0x104   :  { %v386_v17 = vadd.f32 %v385_v16, %v380_v15 }
 0x106   :  { %v387_v18 = vmax.f32 %v386_v17, 0.0 }
 0x108   :  { %v388_v19 = vpack.c.bf16 %v387_v18, %v387_v18 }
 0x10a   :  { %576 = vmatmul.mubr.bf16.vlgmr.msra.gmra.mrb[4].mxu1 %v388_v19 }
 0x1dd   :  { %v487_v20 = vpop.f32.mrb[4].mxu1 }
 0x1de   :  { %493 = vst [vmem:[#allocation2] sm:$0xff] %v487_v20  ;;  %v577_v21 = vpop.f32.mrb[5].mxu1 }
 0x1df   :  { %v490_v22 = vpop.f32.mrb[6].mxu1 }
 0x1e0   :  { %645 = shalt.err (!%p642_p4)
}
 0x1e1   :  { %s646_s13 = scalar_lea.hbm %s810_s3, 128 }
 0x1e2   :  { %p647_p5 = scmp.ne.s32.totalorder %s810_s3, %s646_s13  ;;  %p650_p6 = scmp.lt.u32.totalorder %s646_s13, %s810_s3 }
 0x1e4   :  { %p652_p7 = pnand %p650_p6, %p647_p5 }
 0x1e6   :  { %655 = shalt.err (!%p652_p7)
}
 0x1e7   :  { %503 = dma.vmem_to_hbm [thread:$0]  %s501_s9, 128, %s810_s3, [#allocation3]   ;;  %v578_v23 = vpop.f32.mrb[7].mxu1 }
 0x1e8   :  { %656 = dma.done.wait [#allocation3], 128  }
 0x1e9   :  { %657 = vsyncadd [#allocation3], 4294967168 }
 0x1ea   :  { %507 = vsyncpa [#allocation3], 1 }

</bundles_post_ra>
